<compile_context>
chip_gen: v7x
topology: tpu7x:2x2x1
jax: 0.10.0
libtpu: 0.0.40
codegen_flags: <defaults>
</compile_context>

<pallas_src>
import functools

import jax
import jax.numpy as jnp
from jax.experimental import pallas as pl
from jax.experimental.pallas import tpu as pltpu


# ----------------------------------------------------------------------------
# Kernels
# ----------------------------------------------------------------------------
def _factor_scale_kernel(x_ref, w1_ref, b1_ref, w2_ref, b2_ref, x_proj_ref):
    """test=True path: x_proj = relu(relu(x @ W1 + b1) @ W2 + b2)."""
    x = x_ref[...].astype(jnp.bfloat16)
    h1 = jnp.maximum(
        jnp.dot(x, w1_ref[...], preferred_element_type=jnp.float32)
        + b1_ref[...], 0.0)
    p = jnp.maximum(
        jnp.dot(h1.astype(jnp.bfloat16), w2_ref[...],
                preferred_element_type=jnp.float32) + b2_ref[...], 0.0)
    x_proj_ref[...] = p.astype(x_proj_ref.dtype)


def _mask_learner_kernel(sigm_ref, x_ref, w1_ref, b1_ref, w2_ref, b2_ref,
                         w3_ref, b3_ref, w4_ref, b4_ref,
                         x_hat_ref, xp_ref, xm_ref):
    """test=False path: full mask-learning forward; only x_hat is written out.

    sigm_ref : (F, F) sigmoid(mask) in SMEM (scalar reads).
    xp_ref / xm_ref : (TILE_B, H) f32 VMEM scratch for x_proj / x_mixed.
    """
    F_ = sigm_ref.shape[0]
    H = w2_ref.shape[1]
    V = H // F_

    # factor_scale_proj: Linear -> ReLU -> Linear, then outer ReLU.
    x = x_ref[...].astype(jnp.bfloat16)
    h1 = jnp.maximum(
        jnp.dot(x, w1_ref[...], preferred_element_type=jnp.float32)
        + b1_ref[...], 0.0)
    xp_ref[...] = jnp.maximum(
        jnp.dot(h1.astype(jnp.bfloat16), w2_ref[...],
                preferred_element_type=jnp.float32) + b2_ref[...], 0.0)

    # einsum('ij,bjv->biv', sigmoid(mask), x_proj.reshape(B,F,V)) expressed as
    # an F x F VPU scale-and-add over width-V lane blocks -- no kron(M, I_V)
    # operand and no extra MXU work.
    for i in range(F_):
        acc = sigm_ref[i, 0] * xp_ref[:, 0:V]
        for j in range(1, F_):
            acc = acc + sigm_ref[i, j] * xp_ref[:, j * V:(j + 1) * V]
        xm_ref[:, i * V:(i + 1) * V] = acc

    # transition_proj: Linear -> ReLU -> Linear, then outer ReLU.
    h3 = jnp.maximum(
        jnp.dot(xm_ref[...].astype(jnp.bfloat16), w3_ref[...],
                preferred_element_type=jnp.float32) + b3_ref[...], 0.0)
    x_hat = jnp.maximum(
        jnp.dot(h3.astype(jnp.bfloat16), w4_ref[...],
                preferred_element_type=jnp.float32) + b4_ref[...], 0.0)
    x_hat_ref[...] = x_hat.astype(x_hat_ref.dtype)


# ----------------------------------------------------------------------------
# Wrapper
# ----------------------------------------------------------------------------
def _round_up(n, m):
    return ((n + m - 1) // m) * m


@functools.partial(
    jax.jit,
    static_argnames=("num_factors", "vector_size_per_factor", "test",
                     "batch_tile"))
def self_supervised_mask_learner(params, x, *, num_factors,
                                 vector_size_per_factor, test=True,
                                 batch_tile=256):
    x_orig = x
    B, D = x.shape
    F_, V = num_factors, vector_size_per_factor
    H = F_ * V

    # Batch tiling: pad rows to a sublane-friendly multiple, grid over batch so
    # activation tiles are double-buffered while weights stay VMEM-resident.
    # batch_tile=256 targets v6e/v7x MXU occupancy; 128 is enough on v5e.
    tile_b = min(_round_up(B, 8), batch_tile)
    B_pad = _round_up(B, tile_b)
    if B_pad != B:
        x = jnp.pad(x, ((0, B_pad - B), (0, 0)))

    # bf16 weights for the MXU (half the weight HBM/VMEM traffic); f32 biases.
    w1 = params["w1"].astype(jnp.bfloat16)
    w2 = params["w2"].astype(jnp.bfloat16)
    b1, b2 = params["b1"], params["b2"]

    grid = (B_pad // tile_b,)
    x_spec = pl.BlockSpec((tile_b, D), lambda i: (i, 0))
    proj_spec = pl.BlockSpec((tile_b, H), lambda i: (i, 0))

    def const_spec(arr):  # weights/biases: same block every grid step
        return pl.BlockSpec(arr.shape, lambda i: (0, 0))

    cparams = pltpu.CompilerParams(dimension_semantics=("parallel",))

    if test:
        x_proj = pl.pallas_call(
            _factor_scale_kernel,
            out_shape=jax.ShapeDtypeStruct((B_pad, H), x.dtype),
            grid=grid,
            in_specs=[x_spec, const_spec(w1), const_spec(b1),
                      const_spec(w2), const_spec(b2)],
            out_specs=proj_spec,
            compiler_params=cparams,
        )(x, w1, b1, w2, b2)
        # .detach() in the reference is a no-op for inference semantics here.
        return x_proj[:B]

    w3 = params["w3"].astype(jnp.bfloat16)
    w4 = params["w4"].astype(jnp.bfloat16)
    b3, b4 = params["b3"], params["b4"]
    sigm = jax.nn.sigmoid(params["mask"])  # (F, F) -- tiny, lives in SMEM

    smem_spec = pl.BlockSpec(memory_space=pltpu.MemorySpace.SMEM)

    x_hat_full = pl.pallas_call(
        _mask_learner_kernel,
        out_shape=jax.ShapeDtypeStruct((B_pad, D), x.dtype),
        grid=grid,
        in_specs=[smem_spec, x_spec,
                  const_spec(w1), const_spec(b1),
                  const_spec(w2), const_spec(b2),
                  const_spec(w3), const_spec(b3),
                  const_spec(w4), const_spec(b4)],
        out_specs=x_spec,
        scratch_shapes=[pltpu.VMEM((tile_b, H), jnp.float32),
                        pltpu.VMEM((tile_b, H), jnp.float32)],
        compiler_params=cparams,
    )(sigm, x, w1, b1, w2, b2, w3, b3, w4, b4)

    # The [:-1] row-drop from the reference module (lazy slice outside kernel).
    x_hat = x_hat_full[:B][:-1]
    return x_orig, x_hat, params["mask"]


# ----------------------------------------------------------------------------
# Parameter init (shapes match the nn.Module __init__) and pure-JAX reference
# ----------------------------------------------------------------------------
def init_params(key, backbone_dim, vector_size_per_factor, num_factors):
    hidden = num_factors * vector_size_per_factor
    ks = jax.random.split(key, 5)

    def linear(k, fin, fout):
        kw, kb = jax.random.split(k)
        bound = 1.0 / jnp.sqrt(jnp.float32(fin))
        w = jax.random.uniform(kw, (fin, fout), jnp.float32, -bound, bound)
        b = jax.random.uniform(kb, (1, fout), jnp.float32, -bound, bound)
        return w, b

    w1, b1 = linear(ks[0], backbone_dim, hidden)   # factor_scale_proj[0]
    w2, b2 = linear(ks[1], hidden, hidden)         # factor_scale_proj[2]
    w3, b3 = linear(ks[2], hidden, hidden)         # transition_proj[0]
    w4, b4 = linear(ks[3], hidden, backbone_dim)   # transition_proj[2]
    mask = jax.random.normal(ks[4], (num_factors, num_factors), jnp.float32)
    return dict(w1=w1, b1=b1, w2=w2, b2=b2, w3=w3, b3=b3, w4=w4, b4=b4,
                mask=mask)


def _reference_forward(params, x, num_factors, vector_size_per_factor, test):
    """Pure-JAX reference mirroring the PyTorch forward (bf16 matmuls to match
    the kernel's MXU precision, f32 accumulation)."""
    F_, V = num_factors, vector_size_per_factor
    H = F_ * V

    def lin(h, w, b):
        return jnp.dot(h.astype(jnp.bfloat16), w.astype(jnp.bfloat16),
                       preferred_element_type=jnp.float32) + b

    h1 = jnp.maximum(lin(x, params["w1"], params["b1"]), 0.0)
    x_proj = jnp.maximum(lin(h1, params["w2"], params["b2"]), 0.0)
    if test:
        return x_proj
    B = x.shape[0]
    M = jax.nn.sigmoid(params["mask"])
    x_mixed = jnp.einsum('ij,bjv->biv', M,
                         x_proj.reshape(B, F_, V)).reshape(B, H)
    h3 = jnp.maximum(lin(x_mixed, params["w3"], params["b3"]), 0.0)
    x_hat = jnp.maximum(lin(h3, params["w4"], params["b4"]), 0.0)[:-1]
    return x, x_hat, params["mask"]


if __name__ == "__main__":
    backbone_dim = 32
    num_factors = 4
    vector_size_per_factor = 8
    batch = 8

    key = jax.random.PRNGKey(0)
    k_param, k_x = jax.random.split(key)
    params = init_params(k_param, backbone_dim, vector_size_per_factor,
                         num_factors)
    x = jax.random.normal(k_x, (batch, backbone_dim), jnp.float32)

    # test=False branch (full mask-learning path).
    out_x, out_x_hat, out_mask = self_supervised_mask_learner(
        params, x, num_factors=num_factors,
        vector_size_per_factor=vector_size_per_factor, test=False)
    jax.block_until_ready((out_x, out_x_hat, out_mask))

    # test=True branch (factor_scale_proj only).
    out_proj = self_supervised_mask_learner(
        params, x, num_factors=num_factors,
        vector_size_per_factor=vector_size_per_factor, test=True)
    jax.block_until_ready(out_proj)

    # Correctness check against the pure-JAX reference.
    ref_x, ref_x_hat, ref_mask = _reference_forward(
        params, x, num_factors, vector_size_per_factor, test=False)
    ref_proj = _reference_forward(
        params, x, num_factors, vector_size_per_factor, test=True)

    assert out_x_hat.shape == (batch - 1, backbone_dim)
    assert out_proj.shape == (batch, num_factors * vector_size_per_factor)
    assert jnp.allclose(out_x, ref_x)
    assert jnp.allclose(out_x_hat, ref_x_hat, atol=2e-2, rtol=2e-2)
    assert jnp.allclose(out_mask, ref_mask)
    assert jnp.allclose(out_proj, ref_proj, atol=2e-2, rtol=2e-2)

    print("KERNEL_OK")
</pallas_src>

<mosaic_0001>
module attributes {stable_mosaic.version = 11 : i64} {
  func.func @_mask_learner_kernel(%arg0: i32, %arg1: memref<4x4xf32, #tpu.memory_space<smem>>, %arg2: memref<8x32xf32, #tpu.memory_space<vmem>>, %arg3: memref<32x32xbf16, #tpu.memory_space<vmem>>, %arg4: memref<1x32xf32, #tpu.memory_space<vmem>>, %arg5: memref<32x32xbf16, #tpu.memory_space<vmem>>, %arg6: memref<1x32xf32, #tpu.memory_space<vmem>>, %arg7: memref<32x32xbf16, #tpu.memory_space<vmem>>, %arg8: memref<1x32xf32, #tpu.memory_space<vmem>>, %arg9: memref<32x32xbf16, #tpu.memory_space<vmem>>, %arg10: memref<1x32xf32, #tpu.memory_space<vmem>>, %arg11: memref<8x32xf32, #tpu.memory_space<vmem>>, %arg12: memref<8x32xf32, #tpu.memory_space<vmem>>, %arg13: memref<8x32xf32, #tpu.memory_space<vmem>>) attributes {dimension_semantics = [#tpu.dimension_semantics<parallel>], iteration_bounds = array<i64: 1>, scalar_prefetch = 0 : i64, scratch_operands = 2 : i64, tpu.core_type = #tpu.core_type<tc>, window_params = [{transform_indices = @transform_0, window_bounds = array<i64: 4, 4>}, {transform_indices = @transform_1, window_bounds = array<i64: 8, 32>}, {pipeline_mode = #tpu.pipeline_mode<synchronous>, transform_indices = @transform_2, window_bounds = array<i64: 32, 32>}, {pipeline_mode = #tpu.pipeline_mode<synchronous>, transform_indices = @transform_3, window_bounds = array<i64: 1, 32>}, {pipeline_mode = #tpu.pipeline_mode<synchronous>, transform_indices = @transform_4, window_bounds = array<i64: 32, 32>}, {pipeline_mode = #tpu.pipeline_mode<synchronous>, transform_indices = @transform_5, window_bounds = array<i64: 1, 32>}, {pipeline_mode = #tpu.pipeline_mode<synchronous>, transform_indices = @transform_6, window_bounds = array<i64: 32, 32>}, {pipeline_mode = #tpu.pipeline_mode<synchronous>, transform_indices = @transform_7, window_bounds = array<i64: 1, 32>}, {pipeline_mode = #tpu.pipeline_mode<synchronous>, transform_indices = @transform_8, window_bounds = array<i64: 32, 32>}, {pipeline_mode = #tpu.pipeline_mode<synchronous>, transform_indices = @transform_9, window_bounds = array<i64: 1, 32>}, {transform_indices = @transform_10, window_bounds = array<i64: 8, 32>}]} {
    %c0 = arith.constant 0 : index
    %c0_0 = arith.constant 0 : index
    %0 = vector.load %arg2[%c0, %c0_0] : memref<8x32xf32, #tpu.memory_space<vmem>>, vector<8x32xf32>
    %1 = arith.truncf %0 : vector<8x32xf32> to vector<8x32xbf16>
    %c0_1 = arith.constant 0 : index
    %c0_2 = arith.constant 0 : index
    %2 = vector.load %arg3[%c0_1, %c0_2] : memref<32x32xbf16, #tpu.memory_space<vmem>>, vector<32x32xbf16>
    %cst = arith.constant dense<0.000000e+00> : vector<8x32xf32>
    %3 = tpu.matmul %1, %2, %cst {dimension_numbers = #tpu.dot_dimension_numbers<[1], [0], [0], [1], [0, 0, 1, 1], [], []>} : vector<8x32xbf16>, vector<32x32xbf16>, vector<8x32xf32> -> vector<8x32xf32>
    %c0_3 = arith.constant 0 : index
    %c0_4 = arith.constant 0 : index
    %4 = vector.load %arg4[%c0_3, %c0_4] : memref<1x32xf32, #tpu.memory_space<vmem>>, vector<1x32xf32>
    %5 = vector.broadcast %4 : vector<1x32xf32> to vector<8x32xf32>
    %6 = arith.addf %3, %5 : vector<8x32xf32>
    %cst_5 = arith.constant 0.000000e+00 : f32
    %7 = vector.broadcast %cst_5 : f32 to vector<8x32xf32>
    %8 = arith.maximumf %6, %7 : vector<8x32xf32>
    %9 = arith.truncf %8 : vector<8x32xf32> to vector<8x32xbf16>
    %c0_6 = arith.constant 0 : index
    %c0_7 = arith.constant 0 : index
    %10 = vector.load %arg5[%c0_6, %c0_7] : memref<32x32xbf16, #tpu.memory_space<vmem>>, vector<32x32xbf16>
    %cst_8 = arith.constant dense<0.000000e+00> : vector<8x32xf32>
    %11 = tpu.matmul %9, %10, %cst_8 {dimension_numbers = #tpu.dot_dimension_numbers<[1], [0], [0], [1], [0, 0, 1, 1], [], []>} : vector<8x32xbf16>, vector<32x32xbf16>, vector<8x32xf32> -> vector<8x32xf32>
    %c0_9 = arith.constant 0 : index
    %c0_10 = arith.constant 0 : index
    %12 = vector.load %arg6[%c0_9, %c0_10] : memref<1x32xf32, #tpu.memory_space<vmem>>, vector<1x32xf32>
    %13 = vector.broadcast %12 : vector<1x32xf32> to vector<8x32xf32>
    %14 = arith.addf %11, %13 : vector<8x32xf32>
    %cst_11 = arith.constant 0.000000e+00 : f32
    %15 = vector.broadcast %cst_11 : f32 to vector<8x32xf32>
    %16 = arith.maximumf %14, %15 : vector<8x32xf32>
    %c0_12 = arith.constant 0 : index
    %c0_13 = arith.constant 0 : index
    %17 = vector.load %arg12[%c0_12, %c0_13] : memref<8x32xf32, #tpu.memory_space<vmem>>, vector<8x32xf32>
    tpu.vector_store %arg12[%c0_12, %c0_13], %16 {strides = array<i32>} : memref<8x32xf32, #tpu.memory_space<vmem>>, vector<8x32xf32>,
    %c0_14 = arith.constant 0 : index
    %c0_15 = arith.constant 0 : index
    %18 = memref.load %arg1[%c0_14, %c0_15] : memref<4x4xf32, #tpu.memory_space<smem>>
    %c0_16 = arith.constant 0 : index
    %c0_17 = arith.constant 0 : index
    %19 = vector.load %arg12[%c0_16, %c0_17] : memref<8x32xf32, #tpu.memory_space<vmem>>, vector<8x8xf32>
    %20 = vector.broadcast %18 : f32 to vector<8x8xf32>
    %21 = arith.mulf %20, %19 : vector<8x8xf32>
    %c0_18 = arith.constant 0 : index
    %c1 = arith.constant 1 : index
    %22 = memref.load %arg1[%c0_18, %c1] : memref<4x4xf32, #tpu.memory_space<smem>>
    %c0_19 = arith.constant 0 : index
    %c8 = arith.constant 8 : index
    %23 = vector.load %arg12[%c0_19, %c8] : memref<8x32xf32, #tpu.memory_space<vmem>>, vector<8x8xf32>
    %24 = vector.broadcast %22 : f32 to vector<8x8xf32>
    %25 = arith.mulf %24, %23 : vector<8x8xf32>
    %26 = arith.addf %21, %25 : vector<8x8xf32>
    %c0_20 = arith.constant 0 : index
    %c2 = arith.constant 2 : index
    %27 = memref.load %arg1[%c0_20, %c2] : memref<4x4xf32, #tpu.memory_space<smem>>
    %c0_21 = arith.constant 0 : index
    %c16 = arith.constant 16 : index
    %28 = vector.load %arg12[%c0_21, %c16] : memref<8x32xf32, #tpu.memory_space<vmem>>, vector<8x8xf32>
    %29 = vector.broadcast %27 : f32 to vector<8x8xf32>
    %30 = arith.mulf %29, %28 : vector<8x8xf32>
    %31 = arith.addf %26, %30 : vector<8x8xf32>
    %c0_22 = arith.constant 0 : index
    %c3 = arith.constant 3 : index
    %32 = memref.load %arg1[%c0_22, %c3] : memref<4x4xf32, #tpu.memory_space<smem>>
    %c0_23 = arith.constant 0 : index
    %c24 = arith.constant 24 : index
    %33 = vector.load %arg12[%c0_23, %c24] : memref<8x32xf32, #tpu.memory_space<vmem>>, vector<8x8xf32>
    %34 = vector.broadcast %32 : f32 to vector<8x8xf32>
    %35 = arith.mulf %34, %33 : vector<8x8xf32>
    %36 = arith.addf %31, %35 : vector<8x8xf32>
    %c0_24 = arith.constant 0 : index
    %c0_25 = arith.constant 0 : index
    %37 = vector.load %arg13[%c0_24, %c0_25] : memref<8x32xf32, #tpu.memory_space<vmem>>, vector<8x8xf32>
    tpu.vector_store %arg13[%c0_24, %c0_25], %36 {strides = array<i32>} : memref<8x32xf32, #tpu.memory_space<vmem>>, vector<8x8xf32>,
    %c1_26 = arith.constant 1 : index
    %c0_27 = arith.constant 0 : index
    %38 = memref.load %arg1[%c1_26, %c0_27] : memref<4x4xf32, #tpu.memory_space<smem>>
    %c0_28 = arith.constant 0 : index
    %c0_29 = arith.constant 0 : index
    %39 = vector.load %arg12[%c0_28, %c0_29] : memref<8x32xf32, #tpu.memory_space<vmem>>, vector<8x8xf32>
    %40 = vector.broadcast %38 : f32 to vector<8x8xf32>
    %41 = arith.mulf %40, %39 : vector<8x8xf32>
    %c1_30 = arith.constant 1 : index
    %c1_31 = arith.constant 1 : index
    %42 = memref.load %arg1[%c1_30, %c1_31] : memref<4x4xf32, #tpu.memory_space<smem>>
    %c0_32 = arith.constant 0 : index
    %c8_33 = arith.constant 8 : index
    %43 = vector.load %arg12[%c0_32, %c8_33] : memref<8x32xf32, #tpu.memory_space<vmem>>, vector<8x8xf32>
    %44 = vector.broadcast %42 : f32 to vector<8x8xf32>
    %45 = arith.mulf %44, %43 : vector<8x8xf32>
    %46 = arith.addf %41, %45 : vector<8x8xf32>
    %c1_34 = arith.constant 1 : index
    %c2_35 = arith.constant 2 : index
    %47 = memref.load %arg1[%c1_34, %c2_35] : memref<4x4xf32, #tpu.memory_space<smem>>
    %c0_36 = arith.constant 0 : index
    %c16_37 = arith.constant 16 : index
    %48 = vector.load %arg12[%c0_36, %c16_37] : memref<8x32xf32, #tpu.memory_space<vmem>>, vector<8x8xf32>
    %49 = vector.broadcast %47 : f32 to vector<8x8xf32>
    %50 = arith.mulf %49, %48 : vector<8x8xf32>
    %51 = arith.addf %46, %50 : vector<8x8xf32>
    %c1_38 = arith.constant 1 : index
    %c3_39 = arith.constant 3 : index
    %52 = memref.load %arg1[%c1_38, %c3_39] : memref<4x4xf32, #tpu.memory_space<smem>>
    %c0_40 = arith.constant 0 : index
    %c24_41 = arith.constant 24 : index
    %53 = vector.load %arg12[%c0_40, %c24_41] : memref<8x32xf32, #tpu.memory_space<vmem>>, vector<8x8xf32>
    %54 = vector.broadcast %52 : f32 to vector<8x8xf32>
    %55 = arith.mulf %54, %53 : vector<8x8xf32>
    %56 = arith.addf %51, %55 : vector<8x8xf32>
    %c0_42 = arith.constant 0 : index
    %c8_43 = arith.constant 8 : index
    %57 = vector.load %arg13[%c0_42, %c8_43] : memref<8x32xf32, #tpu.memory_space<vmem>>, vector<8x8xf32>
    tpu.vector_store %arg13[%c0_42, %c8_43], %56 {strides = array<i32>} : memref<8x32xf32, #tpu.memory_space<vmem>>, vector<8x8xf32>,
    %c2_44 = arith.constant 2 : index
    %c0_45 = arith.constant 0 : index
    %58 = memref.load %arg1[%c2_44, %c0_45] : memref<4x4xf32, #tpu.memory_space<smem>>
    %c0_46 = arith.constant 0 : index
    %c0_47 = arith.constant 0 : index
    %59 = vector.load %arg12[%c0_46, %c0_47] : memref<8x32xf32, #tpu.memory_space<vmem>>, vector<8x8xf32>
    %60 = vector.broadcast %58 : f32 to vector<8x8xf32>
    %61 = arith.mulf %60, %59 : vector<8x8xf32>
    %c2_48 = arith.constant 2 : index
    %c1_49 = arith.constant 1 : index
    %62 = memref.load %arg1[%c2_48, %c1_49] : memref<4x4xf32, #tpu.memory_space<smem>>
    %c0_50 = arith.constant 0 : index
    %c8_51 = arith.constant 8 : index
    %63 = vector.load %arg12[%c0_50, %c8_51] : memref<8x32xf32, #tpu.memory_space<vmem>>, vector<8x8xf32>
    %64 = vector.broadcast %62 : f32 to vector<8x8xf32>
    %65 = arith.mulf %64, %63 : vector<8x8xf32>
    %66 = arith.addf %61, %65 : vector<8x8xf32>
    %c2_52 = arith.constant 2 : index
    %c2_53 = arith.constant 2 : index
    %67 = memref.load %arg1[%c2_52, %c2_53] : memref<4x4xf32, #tpu.memory_space<smem>>
    %c0_54 = arith.constant 0 : index
    %c16_55 = arith.constant 16 : index
    %68 = vector.load %arg12[%c0_54, %c16_55] : memref<8x32xf32, #tpu.memory_space<vmem>>, vector<8x8xf32>
    %69 = vector.broadcast %67 : f32 to vector<8x8xf32>
    %70 = arith.mulf %69, %68 : vector<8x8xf32>
    %71 = arith.addf %66, %70 : vector<8x8xf32>
    %c2_56 = arith.constant 2 : index
    %c3_57 = arith.constant 3 : index
    %72 = memref.load %arg1[%c2_56, %c3_57] : memref<4x4xf32, #tpu.memory_space<smem>>
    %c0_58 = arith.constant 0 : index
    %c24_59 = arith.constant 24 : index
    %73 = vector.load %arg12[%c0_58, %c24_59] : memref<8x32xf32, #tpu.memory_space<vmem>>, vector<8x8xf32>
    %74 = vector.broadcast %72 : f32 to vector<8x8xf32>
    %75 = arith.mulf %74, %73 : vector<8x8xf32>
    %76 = arith.addf %71, %75 : vector<8x8xf32>
    %c0_60 = arith.constant 0 : index
    %c16_61 = arith.constant 16 : index
    %77 = vector.load %arg13[%c0_60, %c16_61] : memref<8x32xf32, #tpu.memory_space<vmem>>, vector<8x8xf32>
    tpu.vector_store %arg13[%c0_60, %c16_61], %76 {strides = array<i32>} : memref<8x32xf32, #tpu.memory_space<vmem>>, vector<8x8xf32>,
    %c3_62 = arith.constant 3 : index
    %c0_63 = arith.constant 0 : index
    %78 = memref.load %arg1[%c3_62, %c0_63] : memref<4x4xf32, #tpu.memory_space<smem>>
    %c0_64 = arith.constant 0 : index
    %c0_65 = arith.constant 0 : index
    %79 = vector.load %arg12[%c0_64, %c0_65] : memref<8x32xf32, #tpu.memory_space<vmem>>, vector<8x8xf32>
    %80 = vector.broadcast %78 : f32 to vector<8x8xf32>
    %81 = arith.mulf %80, %79 : vector<8x8xf32>
    %c3_66 = arith.constant 3 : index
    %c1_67 = arith.constant 1 : index
    %82 = memref.load %arg1[%c3_66, %c1_67] : memref<4x4xf32, #tpu.memory_space<smem>>
    %c0_68 = arith.constant 0 : index
    %c8_69 = arith.constant 8 : index
    %83 = vector.load %arg12[%c0_68, %c8_69] : memref<8x32xf32, #tpu.memory_space<vmem>>, vector<8x8xf32>
    %84 = vector.broadcast %82 : f32 to vector<8x8xf32>
    %85 = arith.mulf %84, %83 : vector<8x8xf32>
    %86 = arith.addf %81, %85 : vector<8x8xf32>
    %c3_70 = arith.constant 3 : index
    %c2_71 = arith.constant 2 : index
    %87 = memref.load %arg1[%c3_70, %c2_71] : memref<4x4xf32, #tpu.memory_space<smem>>
    %c0_72 = arith.constant 0 : index
    %c16_73 = arith.constant 16 : index
    %88 = vector.load %arg12[%c0_72, %c16_73] : memref<8x32xf32, #tpu.memory_space<vmem>>, vector<8x8xf32>
    %89 = vector.broadcast %87 : f32 to vector<8x8xf32>
    %90 = arith.mulf %89, %88 : vector<8x8xf32>
    %91 = arith.addf %86, %90 : vector<8x8xf32>
    %c3_74 = arith.constant 3 : index
    %c3_75 = arith.constant 3 : index
    %92 = memref.load %arg1[%c3_74, %c3_75] : memref<4x4xf32, #tpu.memory_space<smem>>
    %c0_76 = arith.constant 0 : index
    %c24_77 = arith.constant 24 : index
    %93 = vector.load %arg12[%c0_76, %c24_77] : memref<8x32xf32, #tpu.memory_space<vmem>>, vector<8x8xf32>
    %94 = vector.broadcast %92 : f32 to vector<8x8xf32>
    %95 = arith.mulf %94, %93 : vector<8x8xf32>
    %96 = arith.addf %91, %95 : vector<8x8xf32>
    %c0_78 = arith.constant 0 : index
    %c24_79 = arith.constant 24 : index
    %97 = vector.load %arg13[%c0_78, %c24_79] : memref<8x32xf32, #tpu.memory_space<vmem>>, vector<8x8xf32>
    tpu.vector_store %arg13[%c0_78, %c24_79], %96 {strides = array<i32>} : memref<8x32xf32, #tpu.memory_space<vmem>>, vector<8x8xf32>,
    %c0_80 = arith.constant 0 : index
    %c0_81 = arith.constant 0 : index
    %98 = vector.load %arg13[%c0_80, %c0_81] : memref<8x32xf32, #tpu.memory_space<vmem>>, vector<8x32xf32>
    %99 = arith.truncf %98 : vector<8x32xf32> to vector<8x32xbf16>
    %c0_82 = arith.constant 0 : index
    %c0_83 = arith.constant 0 : index
    %100 = vector.load %arg7[%c0_82, %c0_83] : memref<32x32xbf16, #tpu.memory_space<vmem>>, vector<32x32xbf16>
    %cst_84 = arith.constant dense<0.000000e+00> : vector<8x32xf32>
    %101 = tpu.matmul %99, %100, %cst_84 {dimension_numbers = #tpu.dot_dimension_numbers<[1], [0], [0], [1], [0, 0, 1, 1], [], []>} : vector<8x32xbf16>, vector<32x32xbf16>, vector<8x32xf32> -> vector<8x32xf32>
    %c0_85 = arith.constant 0 : index
    %c0_86 = arith.constant 0 : index
    %102 = vector.load %arg8[%c0_85, %c0_86] : memref<1x32xf32, #tpu.memory_space<vmem>>, vector<1x32xf32>
    %103 = vector.broadcast %102 : vector<1x32xf32> to vector<8x32xf32>
    %104 = arith.addf %101, %103 : vector<8x32xf32>
    %cst_87 = arith.constant 0.000000e+00 : f32
    %105 = vector.broadcast %cst_87 : f32 to vector<8x32xf32>
    %106 = arith.maximumf %104, %105 : vector<8x32xf32>
    %107 = arith.truncf %106 : vector<8x32xf32> to vector<8x32xbf16>
    %c0_88 = arith.constant 0 : index
    %c0_89 = arith.constant 0 : index
    %108 = vector.load %arg9[%c0_88, %c0_89] : memref<32x32xbf16, #tpu.memory_space<vmem>>, vector<32x32xbf16>
    %cst_90 = arith.constant dense<0.000000e+00> : vector<8x32xf32>
    %109 = tpu.matmul %107, %108, %cst_90 {dimension_numbers = #tpu.dot_dimension_numbers<[1], [0], [0], [1], [0, 0, 1, 1], [], []>} : vector<8x32xbf16>, vector<32x32xbf16>, vector<8x32xf32> -> vector<8x32xf32>
    %c0_91 = arith.constant 0 : index
    %c0_92 = arith.constant 0 : index
    %110 = vector.load %arg10[%c0_91, %c0_92] : memref<1x32xf32, #tpu.memory_space<vmem>>, vector<1x32xf32>
    %111 = vector.broadcast %110 : vector<1x32xf32> to vector<8x32xf32>
    %112 = arith.addf %109, %111 : vector<8x32xf32>
    %cst_93 = arith.constant 0.000000e+00 : f32
    %113 = vector.broadcast %cst_93 : f32 to vector<8x32xf32>
    %114 = arith.maximumf %112, %113 : vector<8x32xf32>
    %c0_94 = arith.constant 0 : index
    %c0_95 = arith.constant 0 : index
    %115 = vector.load %arg11[%c0_94, %c0_95] : memref<8x32xf32, #tpu.memory_space<vmem>>, vector<8x32xf32>
    tpu.vector_store %arg11[%c0_94, %c0_95], %114 {strides = array<i32>} : memref<8x32xf32, #tpu.memory_space<vmem>>, vector<8x32xf32>,
    return
  }
  func.func @transform_0(%arg0: i32) -> (i32, i32) {
    %c0_i32 = arith.constant 0 : i32
    %c0_i32_0 = arith.constant 0 : i32
    %c0_i32_1 = arith.constant 0 : i32
    return %c0_i32, %c0_i32_0 : i32, i32
  }
  func.func @transform_1(%arg0: i32) -> (i32, i32) {
    %c0_i32 = arith.constant 0 : i32
    %c0_i32_0 = arith.constant 0 : i32
    return %arg0, %c0_i32 : i32, i32
  }
  func.func @transform_2(%arg0: i32) -> (i32, i32) {
    %c0_i32 = arith.constant 0 : i32
    %c0_i32_0 = arith.constant 0 : i32
    %c0_i32_1 = arith.constant 0 : i32
    return %c0_i32, %c0_i32_0 : i32, i32
  }
  func.func @transform_3(%arg0: i32) -> (i32, i32) {
    %c0_i32 = arith.constant 0 : i32
    %c0_i32_0 = arith.constant 0 : i32
    %c0_i32_1 = arith.constant 0 : i32
    return %c0_i32, %c0_i32_0 : i32, i32
  }
  func.func @transform_4(%arg0: i32) -> (i32, i32) {
    %c0_i32 = arith.constant 0 : i32
    %c0_i32_0 = arith.constant 0 : i32
    %c0_i32_1 = arith.constant 0 : i32
    return %c0_i32, %c0_i32_0 : i32, i32
  }
  func.func @transform_5(%arg0: i32) -> (i32, i32) {
    %c0_i32 = arith.constant 0 : i32
    %c0_i32_0 = arith.constant 0 : i32
    %c0_i32_1 = arith.constant 0 : i32
    return %c0_i32, %c0_i32_0 : i32, i32
  }
  func.func @transform_6(%arg0: i32) -> (i32, i32) {
    %c0_i32 = arith.constant 0 : i32
    %c0_i32_0 = arith.constant 0 : i32
    %c0_i32_1 = arith.constant 0 : i32
    return %c0_i32, %c0_i32_0 : i32, i32
  }
  func.func @transform_7(%arg0: i32) -> (i32, i32) {
    %c0_i32 = arith.constant 0 : i32
    %c0_i32_0 = arith.constant 0 : i32
    %c0_i32_1 = arith.constant 0 : i32
    return %c0_i32, %c0_i32_0 : i32, i32
  }
  func.func @transform_8(%arg0: i32) -> (i32, i32) {
    %c0_i32 = arith.constant 0 : i32
    %c0_i32_0 = arith.constant 0 : i32
    %c0_i32_1 = arith.constant 0 : i32
    return %c0_i32, %c0_i32_0 : i32, i32
  }
  func.func @transform_9(%arg0: i32) -> (i32, i32) {
    %c0_i32 = arith.constant 0 : i32
    %c0_i32_0 = arith.constant 0 : i32
    %c0_i32_1 = arith.constant 0 : i32
    return %c0_i32, %c0_i32_0 : i32, i32
  }
  func.func @transform_10(%arg0: i32) -> (i32, i32) {
    %c0_i32 = arith.constant 0 : i32
    %c0_i32_0 = arith.constant 0 : i32
    return %arg0, %c0_i32 : i32, i32
  }
}

</mosaic_0001>

<bundles_post_ra>
// kernel: self_supervised_mask_learner.1
= control target key start
LH: loop header
LB: loop body
LE: loop exit
PB: predicated region body
PF: predicated region fallthrough
CT: control target
= control target key end

     0   :  { %15 = vsyncpa [#allocation6], 0  ;;  %s772_s0 = inlined_call_operand.vmem [shape: f32[4,4], index: 0, kind: input, shape index: {}]   ;;  %s773_s1 = inlined_call_operand.vmem [shape: f32[8,32], index: 1, kind: input, shape index: {}]   ;;  %s774_s2 = inlined_call_operand.vmem [shape: bf16[32,32], index: 2, kind: input, shape index: {}]   ;;  %s775_s3 = inlined_call_operand.vmem [shape: f32[1,32], index: 3, kind: input, shape index: {}]   ;;  %s776_s4 = inlined_call_operand.vmem [shape: bf16[32,32], index: 4, kind: input, shape index: {}]   ;;  %s777_s5 = inlined_call_operand.vmem [shape: f32[1,32], index: 5, kind: input, shape index: {}]   ;;  %s778_s6 = inlined_call_operand.vmem [shape: bf16[32,32], index: 6, kind: input, shape index: {}]   ;;  %s779_s7 = inlined_call_operand.vmem [shape: f32[1,32], index: 7, kind: input, shape index: {}]   ;;  %s780_s8 = inlined_call_operand.vmem [shape: bf16[32,32], index: 8, kind: input, shape index: {}]   ;;  %s781_s9 = inlined_call_operand.vmem [shape: f32[1,32], index: 9, kind: input, shape index: {}]   ;;  %s782_s10 = inlined_call_operand.hbm [shape: f32[8,32], index: 10, kind: output, shape index: {}]  }
   0x1   :  { %16 = vsyncpa [#allocation5], 0  ;;  %s23_s15 = sshll.u32 %s772_s0, 4  ;;  %s24_s15 = int_to_ptr.vmem [resolvable:$true] %s23_s15 }
   0x2   :  { %s567_s16 = scalar_lea.vmem %s24_s15, 64  ;;  %p572_p1 = scmp.lt.s32.totalorder %s24_s15, %s24_s15 }
   0x3   :  { %p568_p0 = scmp.ne.s32.totalorder %s24_s15, %s567_s16  ;;  %p573_p2 = scmp.lt.s32.totalorder %s567_s16, %s567_s16 }
   0x5   :  { %p574_p3 = por %p573_p2, %p572_p1 }
   0x7   :  { %p575_p4 = pnand %p574_p3, %p568_p0 }
   0x9   :  { %578 = shalt.err (!%p575_p4)
}
   0xa   :  { %s605_s17 = smov [#allocation4]  }
   0xb   :  { %26 = dma.vmem_to_smem %s24_s15, 64, %s605_s17, [#allocation6]  }
   0xc   :  { %601 = dma.done.wait [#allocation6], 64  }
   0xd   :  { %602 = vsyncadd [#allocation6], 4294967232 }
   0xe   :  { %48 = sfence }
   0xf   :  { %v559_v0 = vld [vmem:[%s774_s2] sm:$0xff]   ;;  %v606_v1 = vmov 0.0   ;;  %v560_v2 = vld [vmem:[%s774_s2 + $0x8] sm:$0xff]   ;;  %vm607_vm0 = vmmov 0   ;;  %vm75_vm1 = vcmask 261120   ;;  %s486_s28 = sld [smem:[#allocation4 + $0x81]] }
  0x10   :  { %517 = vmatprep.subr.bf16.mxu0 %v606_v1  ;;  %525 = vmatprep.subr.bf16.mxu1 %v606_v1  ;;  %v50_v3 = vld [vmem:[%s773_s1] sm:$0xff]  ;;  %v562_v6 = vld [vmem:[%s776_s4 + $0x8] sm:$0xff]   ;;  %s494_s29 = sld [smem:[#allocation4 + $0x181]]  ;;  %s488_s11 = sld [smem:[#allocation4 + $0x83]]  ;;  %vm217_vm2 = vcmask 64512   ;;  %vm251_vm3 = vcmask 130112  }
  0x11   :  { %518 = vmatpush3.bf16.msra.mxu0 %v559_v0  ;;  %521 = vmatprep.mubr.msk.bf16.mxu0 %vm607_vm0, %v606_v1  ;;  %v51_v4 = vpack.c.bf16 %v50_v3, %v50_v3  ;;  %v561_v5 = vld [vmem:[%s776_s4] sm:$0xff]   ;;  %s490_s30 = sld [smem:[#allocation4 + $0x101]]  ;;  %s491_s12 = sld [smem:[#allocation4 + $0x102]]  ;;  %v564_v61 = vld [vmem:[%s778_s6 + $0x8] sm:$0xff]   ;;  %vm285_vm4 = vcmask 195712   ;;  %vm319_vm5 = vcmask 261312  }
  0x12   :  { %519 = vmatprep.subr.bf16.mxu0 %v606_v1  ;;  %529 = vmatprep.mubr.msk.bf16.mxu1 %vm607_vm0, %v606_v1  ;;  %v474_v7 = vld [vmem:[%s775_s3] ss:$0 sm:$0xff]  ;;  %s487_s3 = sld [smem:[#allocation4 + $0x82]]  ;;  %s608_s14 = smov 112  }
  0x13   :  { %526 = vmatpush3.bf16.msra.mxu1 %v561_v5  ;;  %v478_v15 = vld [vmem:[%s777_s5] ss:$0 sm:$0xff]  ;;  %s492_s5 = sld [smem:[#allocation4 + $0x103]]  ;;  %s495_s13 = sld [smem:[#allocation4 + $0x182]] }
  0x14   :  { %527 = vmatprep.subr.bf16.mxu1 %v606_v1  ;;  %s609_s15 = smov 120   ;;  %s496_s16 = sld [smem:[#allocation4 + $0x183]]  ;;  %v563_v55 = vld [vmem:[%s778_s6] sm:$0xff]  }
  0x15   :  { %520 = vmatpush3.bf16.msra.mxu0 %v560_v2  ;;  %v224_v23 = vstv %s486_s28  ;;  %s482_s17 = sld [smem:[#allocation4 + $0x1]]  ;;  %s483_s18 = sld [smem:[#allocation4 + $0x2]] }
  0x16   :  { %533 = vmatprep.subr.bf16.mxu0 %v606_v1  ;;  %v292_v27 = vstv %s494_s29  ;;  %v240_v31 = vstv %s488_s11  ;;  %s484_s19 = sld [smem:[#allocation4 + $0x3]]  ;;  %s610_s0 = smov 104  }
  0x17   :  { %528 = vmatpush3.bf16.msra.mxu1 %v562_v6  ;;  %v258_v28 = vstv %s490_s30  ;;  %v266_v32 = vstv %s491_s12  ;;  %s485_s20 = sld [smem:[#allocation4 + $0x80]]  ;;  %s611_s26 = smov 8  }
  0x18   :  { %522 = vmatmul.mubr.msk.bf16.vlgmr.msra.gmra.mrb[0].mxu0 %vm75_vm1, %v51_v4  ;;  %541 = vmatprep.subr.bf16.mxu1 %v606_v1  ;;  %v232_v22 = vstv %s487_s3  ;;  %s489_s21 = sld [smem:[#allocation4 + $0x100]]  ;;  %s612_s4 = smov 16  }
  0x19   :  { %537 = vmatprep.mubr.msk.bf16.mxu0 %vm607_vm0, %v606_v1  ;;  %v274_v35 = vstv %s492_s5  ;;  %v300_v36 = vstv %s495_s13  ;;  %s493_s22 = sld [smem:[#allocation4 + $0x180]]  ;;  %534 = vmatpush3.bf16.msra.mxu0 %v563_v55  ;;  %s613_s3 = smov 24  }
  0x1a   :  { %v308_v39 = vstv %s496_s16  ;;  %s189_s2 = sld [smem:[#allocation4]]  ;;  %535 = vmatprep.subr.bf16.mxu0 %v606_v1 }
  0x1b   :  { %v194_v40 = vstv %s482_s17  ;;  %v202_v43 = vstv %s483_s18 }
  0x1c   :  { %v210_v44 = vstv %s484_s19 }
  0x1d   :  { %v221_v47 = vstv %s485_s20  ;;  %536 = vmatpush3.bf16.msra.mxu0 %v564_v61 }
  0x1e   :  { %v255_v53 = vstv %s489_s21 }
  0x1f   :  { %v289_v58 = vstv %s493_s22 }
  0xeb   :  { %v113_v8 = vpop.f32.mrb[0].mxu0 }
  0xec   :  { %v114_v9 = vadd.f32 %v474_v7, %v113_v8  ;;  %v523_v10 = vpop.f32.mrb[1].mxu0  ;;  %v191_v7 = vstv %s189_s2 }
  0xed   :  { %v116_v11 = vpop.f32.mrb[2].mxu0 }
  0xee   :  { %v119_v12 = vmax.f32 %v114_v9, 0.0  ;;  %v524_v13 = vpop.f32.mrb[3].mxu0  ;;  %v565_v11 = vld [vmem:[%s780_s8] sm:$0xff]  }
  0xf0   :  { %v120_v14 = vpack.c.bf16 %v119_v12, %v119_v12 }
  0xf2   :  { %530 = vmatmul.mubr.msk.bf16.vlgmr.msra.gmra.mrb[0].mxu1 %vm75_vm1, %v120_v14 }
  0xf3   :  { %545 = vmatprep.mubr.msk.bf16.mxu1 %vm607_vm0, %v606_v1  ;;  %542 = vmatpush3.bf16.msra.mxu1 %v565_v11 }
  0xf4   :  { %543 = vmatprep.subr.bf16.mxu1 %v606_v1  ;;  %v566_v1 = vld [vmem:[%s780_s8 + $0x8] sm:$0xff]   ;;  %s614_s8 = smov [#allocation7]  }
  0xf5   :  { %s465_s13 = sshll.u32 %s614_s8, 4  ;;  %s466_s13 = int_to_ptr.vmem [resolvable:$true] %s465_s13 }
  0xf6   :  { %p584_p6 = scmp.lt.s32.totalorder %s466_s13, %s466_s13 }
  0xf7   :  { %544 = vmatpush3.bf16.msra.mxu1 %v566_v1 }
 0x1c5   :  { %v181_v16 = vpop.f32.mrb[0].mxu1 }
 0x1c6   :  { %v182_v17 = vadd.f32 %v478_v15, %v181_v16  ;;  %v531_v18 = vpop.f32.mrb[1].mxu1 }
 0x1c7   :  { %v184_v19 = vpop.f32.mrb[2].mxu1 }
 0x1c8   :  { %v187_v20 = vmax.f32 %v182_v17, 0.0  ;;  %v532_v21 = vpop.f32.mrb[3].mxu1 }
 0x1ca   :  { %188 = vst.msk [vmem:[#allocation2] sm:$0xff] %vm75_vm1, %v187_v20 }
 0x1d1   :  { %v711_v24 = vld [vmem:[#allocation2] sm:$0xff] }
 0x1d2   :  { %v233_v25 = vmul.f32 %v232_v22, %v711_v24  ;;  %v225_v26 = vmul.f32 %v224_v23, %v711_v24  ;;  %v293_v29 = vmul.f32 %v292_v27, %v711_v24  ;;  %v259_v30 = vmul.f32 %v258_v28, %v711_v24 }
 0x1d3   :  { %v241_v33 = vmul.f32 %v240_v31, %v711_v24  ;;  %v267_v34 = vmul.f32 %v266_v32, %v711_v24  ;;  %v275_v37 = vmul.f32 %v274_v35, %v711_v24  ;;  %v301_v38 = vmul.f32 %v300_v36, %v711_v24  ;;  %v501_v32 = vld [vmem:[%s781_s9] ss:$0 sm:$0xff] }
 0x1d4   :  { %235 = vrot.lane.b32.xlu1 %v233_v25, %s608_s14  ;;  %227 = vrot.lane.b32.xlu0 %v225_v26, %s609_s15  ;;  %v309_v41 = vmul.f32 %v308_v39, %v711_v24  ;;  %v195_v42 = vmul.f32 %v711_v24, %v194_v40  ;;  %v203_v45 = vmul.f32 %v711_v24, %v202_v43 }
 0x1d5   :  { %v211_v46 = vmul.f32 %v711_v24, %v210_v44  ;;  %v222_v50 = vmul.f32 %v221_v47, %v711_v24  ;;  %v256_v56 = vmul.f32 %v255_v53, %v711_v24  ;;  %v290_v0 = vmul.f32 %v289_v58, %v711_v24 }
 0x1d6   :  { %v192_v13 = vmul.f32 %v711_v24, %v191_v7  ;;  %v497_v24 = vld [vmem:[%s779_s7] ss:$0 sm:$0xff]  ;;  %s579_s7 = scalar_lea.vmem %s466_s13, 128 }
 0x1d7   :  { %p580_p5 = scmp.ne.s32.totalorder %s466_s13, %s579_s7  ;;  %p585_p7 = scmp.lt.s32.totalorder %s579_s7, %s579_s7 }
 0x1d8   :  { %295 = vrot.lane.b32.xlu1 %v293_v29, %s609_s15  ;;  %261 = vrot.lane.b32.xlu0 %v259_v30, %s609_s15 }
 0x1d9   :  { %p586_p8 = por %p585_p7, %p584_p6 }
 0x1db   :  { %p587_p9 = pnand %p586_p8, %p580_p5 }
 0x1dc   :  { %243 = vrot.lane.b32.xlu1 %v241_v33, %s610_s0  ;;  %269 = vrot.lane.b32.xlu0 %v267_v34, %s608_s14 }
 0x1e0   :  { %277 = vrot.lane.b32.xlu1 %v275_v37, %s610_s0  ;;  %303 = vrot.lane.b32.xlu0 %v301_v38, %s608_s14 }
 0x1e4   :  { %311 = vrot.lane.b32.xlu0 %v309_v41, %s610_s0  ;;  %197 = vrot.lane.b32.xlu1 %v195_v42, %s609_s15 }
 0x1e8   :  { %205 = vrot.lane.b32.xlu0 %v203_v45, %s608_s14  ;;  %213 = vrot.lane.b32.xlu1 %v211_v46, %s610_s0 }
 0x246   :  { %v236_v48 = vpop.permute.xlu1 %235  ;;  %v228_v49 = vpop.permute.xlu0 %227 }
 0x247   :  { %v230_v51 = vadd.f32 %v228_v49, %v222_v50 }
 0x249   :  { %v238_v57 = vadd.f32 %v236_v48, %v230_v51 }
 0x24a   :  { %v296_v52 = vpop.permute.xlu1 %295  ;;  %v262_v54 = vpop.permute.xlu0 %261 }
 0x24b   :  { %v264_v62 = vadd.f32 %v262_v54, %v256_v56  ;;  %v298_v5 = vadd.f32 %v296_v52, %v290_v0 }
 0x24e   :  { %v244_v59 = vpop.permute.xlu1 %243  ;;  %v270_v60 = vpop.permute.xlu0 %269 }
 0x24f   :  { %v246_v63 = vadd.f32 %v244_v59, %v238_v57  ;;  %v272_v2 = vadd.f32 %v270_v60, %v264_v62 }
 0x251   :  { %248 = vrot.lane.b32.xlu0 %v246_v63, %s611_s26 }
 0x252   :  { %v278_v3 = vpop.permute.xlu1 %277  ;;  %v304_v4 = vpop.permute.xlu0 %303 }
 0x253   :  { %v280_v6 = vadd.f32 %v278_v3, %v272_v2  ;;  %v306_v8 = vadd.f32 %v304_v4, %v298_v5 }
 0x255   :  { %282 = vrot.lane.b32.xlu1 %v280_v6, %s612_s4 }
 0x256   :  { %v312_v9 = vpop.permute.xlu0 %311  ;;  %v198_v10 = vpop.permute.xlu1 %197 }
 0x257   :  { %v314_v12 = vadd.f32 %v312_v9, %v306_v8  ;;  %v200_v14 = vadd.f32 %v198_v10, %v192_v13 }
 0x259   :  { %316 = vrot.lane.b32.xlu0 %v314_v12, %s613_s3 }
 0x25a   :  { %v206_v15 = vpop.permute.xlu0 %205  ;;  %v214_v17 = vpop.permute.xlu1 %213 }
 0x25b   :  { %v208_v16 = vadd.f32 %v206_v15, %v200_v14 }
 0x25d   :  { %v216_v18 = vadd.f32 %v214_v17, %v208_v16 }
 0x25f   :  { %218 = vst.msk [vmem:[#allocation3] sm:$0xff] %vm217_vm2, %v216_v18 }
 0x2c3   :  { %v249_v19 = vpop.permute.xlu0 %248 }
 0x2c4   :  { %252 = vst.msk [vmem:[#allocation3] sm:$0xff] %vm251_vm3, %v249_v19 }
 0x2c7   :  { %v283_v20 = vpop.permute.xlu1 %282 }
 0x2c8   :  { %286 = vst.msk [vmem:[#allocation3] sm:$0xff] %vm285_vm4, %v283_v20 }
 0x2cb   :  { %v317_v21 = vpop.permute.xlu0 %316 }
 0x2cc   :  { %320 = vst.msk [vmem:[#allocation3] sm:$0xff] %vm319_vm5, %v317_v21 }
 0x2d3   :  { %v321_v22 = vld [vmem:[#allocation3] sm:$0xff] }
 0x2d4   :  { %v322_v23 = vpack.c.bf16 %v321_v22, %v321_v22 }
 0x2d6   :  { %538 = vmatmul.mubr.msk.bf16.vlgmr.msra.gmra.mrb[4].mxu0 %vm75_vm1, %v322_v23 }
 0x3a9   :  { %v383_v25 = vpop.f32.mrb[4].mxu0 }
 0x3aa   :  { %v384_v26 = vadd.f32 %v497_v24, %v383_v25  ;;  %v539_v27 = vpop.f32.mrb[5].mxu0 }
 0x3ab   :  { %v386_v28 = vpop.f32.mrb[6].mxu0 }
 0x3ac   :  { %v389_v29 = vmax.f32 %v384_v26, 0.0  ;;  %v540_v30 = vpop.f32.mrb[7].mxu0 }
 0x3ae   :  { %v390_v31 = vpack.c.bf16 %v389_v29, %v389_v29 }
 0x3b0   :  { %546 = vmatmul.mubr.msk.bf16.vlgmr.msra.gmra.mrb[4].mxu1 %vm75_vm1, %v390_v31 }
 0x483   :  { %v451_v33 = vpop.f32.mrb[4].mxu1 }
 0x484   :  { %v452_v34 = vadd.f32 %v501_v32, %v451_v33  ;;  %v547_v35 = vpop.f32.mrb[5].mxu1 }
 0x485   :  { %v454_v36 = vpop.f32.mrb[6].mxu1 }
 0x486   :  { %v457_v37 = vmax.f32 %v452_v34, 0.0  ;;  %v548_v38 = vpop.f32.mrb[7].mxu1 }
 0x488   :  { %458 = vst.msk [vmem:[#allocation7] sm:$0xff] %vm75_vm1, %v457_v37 }
 0x489   :  { %590 = shalt.err (!%p587_p9)
}
 0x48a   :  { %s591_s15 = scalar_lea.hbm %s782_s10, 128 }
 0x48b   :  { %p592_p10 = scmp.ne.s32.totalorder %s782_s10, %s591_s15  ;;  %p595_p11 = scmp.lt.u32.totalorder %s591_s15, %s782_s10 }
 0x48d   :  { %p597_p12 = pnand %p595_p11, %p592_p10 }
 0x48f   :  { %600 = shalt.err (!%p597_p12)
}
 0x490   :  { %468 = dma.vmem_to_hbm [thread:$0]  %s466_s13, 128, %s782_s10, [#allocation5]  }
 0x491   :  { %603 = dma.done.wait [#allocation5], 128  }
 0x492   :  { %604 = vsyncadd [#allocation5], 4294967168 }
 0x493   :  { %472 = vsyncpa [#allocation5], 1 }
 0x494   :  { %473 = vsyncpa [#allocation6], 1 }

</bundles_post_ra>
